<compile_context>
chip_gen: v5e
topology: v5e:2x2
jax: 0.10.0
libtpu: 0.0.40
codegen_flags: <defaults>
</compile_context>

<pallas_src>
import functools

import jax
import jax.numpy as jnp
from jax.experimental import pallas as pl
from jax.experimental.pallas import tpu as pltpu


def _dro_loss_kernel(x_ref, y_ref, psum_ref, *, eta, k, n_total, tile_n):
    """One batch tile: per-row CE -> DRO transform -> masked partial sum."""
    i = pl.program_id(0)

    x = x_ref[...].astype(jnp.float32)          # (tile_n, C); upcast if bf16
    y = y_ref[...]                               # (tile_n, 1) int32

    # Numerically-stable log-sum-exp over the class axis
    # (torch CrossEntropyLoss: loss_i = logsumexp(x_i) - x_i[y_i]).
    m = jnp.max(x, axis=-1, keepdims=True)                                   # (tile_n, 1)
    lse = m + jnp.log(jnp.sum(jnp.exp(x - m), axis=-1, keepdims=True))       # (tile_n, 1)

    # Gather label logit via one-hot select (no dynamic gather on TPU).
    # Contract: labels must satisfy 0 <= y < C (PyTorch would raise otherwise).
    col = jax.lax.broadcasted_iota(jnp.int32, x.shape, dimension=1)          # (tile_n, C)
    label_logit = jnp.sum(jnp.where(col == y, x, 0.0), axis=-1, keepdims=True)

    loss = lse - label_logit                                                 # (tile_n, 1)

    if k > 0:  # static Python int -> relu + repeated multiplies
        loss = jnp.maximum(loss - jnp.float32(eta), 0.0)
        loss = loss ** k

    # Mask rows past the true batch size (ragged last tile reads padded/garbage
    # rows; jnp.where drops them before the reduction).
    row = i * tile_n + jax.lax.broadcasted_iota(jnp.int32, loss.shape, dimension=0)
    loss = jnp.where(row < n_total, loss, 0.0)

    # Per-tile partial sum (independent output block per grid step).
    psum_ref[...] = jnp.sum(loss).reshape(1, 1, 1)


def _choose_tile_n(n, c, itemsize, target_bytes=6 << 20):
    """Biggest row tile (multiple of 8) whose x-block stays ~<= 6 MiB.

    Double-buffered that is ~12 MiB, which fits v5e's 16 MiB scoped default and
    leaves plenty of headroom on v6e (128 MiB) / v7x (64 MiB physical).
    """
    rows = target_bytes // max(1, c * itemsize)
    if rows >= n:
        return int(n)                      # single tile covering the full batch
    return int(max(8, (rows // 8) * 8))


def dro_loss(x, y, *, eta, k, tile_n=None):
    """x: [N, C] float logits (f32 or bf16), y: [N] int labels. Returns scalar f32."""
    n, c = x.shape
    y2d = y.astype(jnp.int32).reshape(n, 1)

    if tile_n is None:
        tile_n = _choose_tile_n(n, c, x.dtype.itemsize)
    tile_n = int(min(tile_n, n))
    num_tiles = -(-n // tile_n)            # cdiv

    kernel = functools.partial(
        _dro_loss_kernel, eta=float(eta), k=int(k), n_total=int(n), tile_n=tile_n
    )

    partials = pl.pallas_call(
        kernel,
        out_shape=jax.ShapeDtypeStruct((num_tiles, 1, 1), jnp.float32),
        grid=(num_tiles,),
        in_specs=[
            pl.BlockSpec((tile_n, c), lambda i: (i, 0)),
            pl.BlockSpec((tile_n, 1), lambda i: (i, 0)),
        ],
        # Leading tile index on its own axis keeps the last-two block dims equal
        # to the full array dims (no (8,128) alignment issue for the scalar).
        out_specs=pl.BlockSpec((1, 1, 1), lambda i: (i, 0, 0)),
        compiler_params=pltpu.CompilerParams(
            dimension_semantics=("parallel",),
            vmem_limit_bytes=32 * 1024 * 1024,
        ),
    )(x, y2d)

    # Tiny final reduce + normalize by the true batch size, outside the kernel.
    return jnp.sum(partials) / jnp.float32(n)


def _reference(x, y, *, eta, k):
    # Pure-JAX reference for sanity checking.
    lse = jax.nn.logsumexp(x.astype(jnp.float32), axis=-1)
    label_logit = jnp.take_along_axis(
        x.astype(jnp.float32), y[:, None].astype(jnp.int32), axis=-1
    )[:, 0]
    loss = lse - label_logit
    if k > 0:
        loss = jnp.maximum(loss - eta, 0.0) ** k
    return jnp.mean(loss)


if __name__ == "__main__":
    key = jax.random.PRNGKey(0)
    kx, ky = jax.random.split(key)

    # Small shapes consistent with the module (batch of logits + int labels).
    N, C = 8, 32
    eta, k = 0.5, 2

    x = jax.random.normal(kx, (N, C), dtype=jnp.float32)
    y = jax.random.randint(ky, (N,), 0, C, dtype=jnp.int32)

    out = dro_loss(x, y, eta=eta, k=k)
    jax.block_until_ready(out)
    ref = _reference(x, y, eta=eta, k=k)
    assert jnp.allclose(out, ref, rtol=1e-5, atol=1e-5), (out, ref)

    # k == 0 branch (plain mean cross-entropy).
    out0 = dro_loss(x, y, eta=eta, k=0)
    jax.block_until_ready(out0)
    ref0 = _reference(x, y, eta=eta, k=0)
    assert jnp.allclose(out0, ref0, rtol=1e-5, atol=1e-5), (out0, ref0)

    # Multi-tile grid + ragged last tile (N=20, tile_n=8 -> 3 tiles, 4 masked rows).
    N2, C2 = 20, 32
    x2 = jax.random.normal(kx, (N2, C2), dtype=jnp.float32)
    y2 = jax.random.randint(ky, (N2,), 0, C2, dtype=jnp.int32)
    out2 = dro_loss(x2, y2, eta=eta, k=k, tile_n=8)
    jax.block_until_ready(out2)
    ref2 = _reference(x2, y2, eta=eta, k=k)
    assert jnp.allclose(out2, ref2, rtol=1e-5, atol=1e-5), (out2, ref2)

    print("KERNEL_OK")
</pallas_src>

<mosaic_0001>
module attributes {stable_mosaic.version = 11 : i64} {
  func.func @_dro_loss_kernel(%arg0: i32, %arg1: memref<8x32xf32, #tpu.memory_space<vmem>>, %arg2: memref<8x1xi32, #tpu.memory_space<vmem>>, %arg3: memref<1x1x1xf32, #tpu.memory_space<vmem>>) attributes {dimension_semantics = [#tpu.dimension_semantics<parallel>], iteration_bounds = array<i64: 1>, scalar_prefetch = 0 : i64, scratch_operands = 0 : i64, tpu.core_type = #tpu.core_type<tc>, window_params = [{transform_indices = @transform_0, window_bounds = array<i64: 8, 32>}, {transform_indices = @transform_1, window_bounds = array<i64: 8, 1>}, {transform_indices = @transform_2, window_bounds = array<i64: 1, 1, 1>}]} {
    %c0 = arith.constant 0 : index
    %c0_0 = arith.constant 0 : index
    %0 = vector.load %arg1[%c0, %c0_0] : memref<8x32xf32, #tpu.memory_space<vmem>>, vector<8x32xf32>
    %c0_1 = arith.constant 0 : index
    %c0_2 = arith.constant 0 : index
    %1 = vector.load %arg2[%c0_1, %c0_2] : memref<8x1xi32, #tpu.memory_space<vmem>>, vector<8x1xi32>
    %cst = arith.constant dense<0xFF800000> : vector<8xf32>
    %2 = vector.multi_reduction <maximumf>, %0, %cst [1] : vector<8x32xf32> to vector<8xf32>
    %3 = vector.shape_cast %2 : vector<8xf32> to vector<8x1xf32>
    %4 = vector.broadcast %3 : vector<8x1xf32> to vector<8x32xf32>
    %5 = arith.subf %0, %4 : vector<8x32xf32>
    %6 = math.exp %5 : vector<8x32xf32>
    %cst_3 = arith.constant dense<0.000000e+00> : vector<8xf32>
    %7 = vector.multi_reduction <add>, %6, %cst_3 [1] : vector<8x32xf32> to vector<8xf32>
    %8 = vector.shape_cast %7 : vector<8xf32> to vector<8x1xf32>
    %9 = math.log %8 : vector<8x1xf32>
    %10 = arith.addf %3, %9 : vector<8x1xf32>
    %11 = tpu.iota {dimensions = array<i32: 1>} : vector<8x32xi32>
    %12 = vector.broadcast %1 : vector<8x1xi32> to vector<8x32xi32>
    %13 = arith.cmpi eq, %11, %12 : vector<8x32xi32>
    %cst_4 = arith.constant 0.000000e+00 : f32
    %14 = vector.broadcast %cst_4 : f32 to vector<8x32xf32>
    %15 = arith.select %13, %0, %14 : vector<8x32xi1>, vector<8x32xf32>
    %cst_5 = arith.constant dense<0.000000e+00> : vector<8xf32>
    %16 = vector.multi_reduction <add>, %15, %cst_5 [1] : vector<8x32xf32> to vector<8xf32>
    %17 = vector.shape_cast %16 : vector<8xf32> to vector<8x1xf32>
    %18 = arith.subf %10, %17 : vector<8x1xf32>
    %cst_6 = arith.constant 5.000000e-01 : f32
    %19 = vector.broadcast %cst_6 : f32 to vector<8x1xf32>
    %20 = arith.subf %18, %19 : vector<8x1xf32>
    %cst_7 = arith.constant 0.000000e+00 : f32
    %21 = vector.broadcast %cst_7 : f32 to vector<8x1xf32>
    %22 = arith.maximumf %20, %21 : vector<8x1xf32>
    %23 = arith.mulf %22, %22 : vector<8x1xf32>
    %c8_i32 = arith.constant 8 : i32
    %24 = arith.muli %arg0, %c8_i32 : i32
    %25 = tpu.iota {dimensions = array<i32: 0>} : vector<8x1xi32>
    %26 = vector.broadcast %24 : i32 to vector<8x1xi32>
    %27 = arith.addi %26, %25 : vector<8x1xi32>
    %c8_i32_8 = arith.constant 8 : i32
    %28 = vector.broadcast %c8_i32_8 : i32 to vector<8x1xi32>
    %29 = arith.cmpi slt, %27, %28 : vector<8x1xi32>
    %cst_9 = arith.constant 0.000000e+00 : f32
    %30 = vector.broadcast %cst_9 : f32 to vector<8x1xf32>
    %31 = arith.select %29, %23, %30 : vector<8x1xi1>, vector<8x1xf32>
    %32 = vector.shape_cast %31 : vector<8x1xf32> to vector<1x8x1xf32>
    %cst_10 = arith.constant dense<0.000000e+00> : vector<1xf32>
    %33 = vector.multi_reduction <add>, %32, %cst_10 [1, 2] : vector<1x8x1xf32> to vector<1xf32>
    %34 = vector.shape_cast %33 : vector<1xf32> to vector<1x1x1xf32>
    %35 = vector.extract %34[0, 0, 0] : f32 from vector<1x1x1xf32>
    %36 = vector.broadcast %35 : f32 to vector<1x1x1xf32>
    %c0_11 = arith.constant 0 : index
    %c0_12 = arith.constant 0 : index
    %c0_13 = arith.constant 0 : index
    %37 = vector.load %arg3[%c0_11, %c0_12, %c0_13] : memref<1x1x1xf32, #tpu.memory_space<vmem>>, vector<1x1x1xf32>
    tpu.vector_store %arg3[%c0_11, %c0_12, %c0_13], %36 {strides = array<i32>} : memref<1x1x1xf32, #tpu.memory_space<vmem>>, vector<1x1x1xf32>,
    return
  }
  func.func @transform_0(%arg0: i32) -> (i32, i32) {
    %c0_i32 = arith.constant 0 : i32
    %c0_i32_0 = arith.constant 0 : i32
    return %arg0, %c0_i32 : i32, i32
  }
  func.func @transform_1(%arg0: i32) -> (i32, i32) {
    %c0_i32 = arith.constant 0 : i32
    %c0_i32_0 = arith.constant 0 : i32
    return %arg0, %c0_i32 : i32, i32
  }
  func.func @transform_2(%arg0: i32) -> (i32, i32, i32) {
    %c0_i32 = arith.constant 0 : i32
    %c0_i32_0 = arith.constant 0 : i32
    %c0_i32_1 = arith.constant 0 : i32
    return %arg0, %c0_i32, %c0_i32_0 : i32, i32, i32
  }
}

</mosaic_0001>

<bundles_post_ra>
// kernel: tpu_custom_call.1
= control target key start
LH: loop header
LB: loop body
LE: loop exit
PB: predicated region body
PF: predicated region fallthrough
CT: control target
= control target key end

     0   :  { %vm14_vm0 = vcmask 261120   ;;  %s143_s0 = inlined_call_operand.vmem [shape: f32[8,32], index: 0, kind: input, shape index: {}]   ;;  %s144_s1 = inlined_call_operand.vmem [shape: s32[8,1], index: 1, kind: input, shape index: {}]   ;;  %s145_s2 = inlined_call_operand.hbm [shape: f32[1,1,1], index: 2, kind: output, shape index: {}]  }
   0x1   :  { %v12_v0 = vld [vmem:[%s143_s0] sm:$0xff] }
   0x2   :  { %7 = vsyncpa [#allocation3], 0  ;;  %v15_v1 = vsel %vm14_vm0, %v12_v0, -inf  ;;  %v114_v2 = vmov 0   ;;  %v13_v3 = vld [vmem:[%s144_s1] sm:$0xff]  ;;  %v27_v9 = vlaneseq  ;;  %vm48_vm2 = vcmask 7168  }
   0x3   :  { %83 = vset.pattern.permute.xlu0 %v114_v2  ;;  %s115_s0 = smov [#allocation2]   ;;  %s69_s15 = sshll.u32 %s145_s2, 4  ;;  %vm60_vm3 = vcmask 0   ;;  %s70_s15 = int_to_ptr.hbm [resolvable:$true] %s69_s15 }
   0x4   :  { %16 = vmax.xlane.f32.xlu0 %v15_v1  ;;  %v28_v10 = vand.u32 127, %v27_v9  ;;  %s67_s1 = sshll.u32 %s115_s0, 4  ;;  %s68_s1 = int_to_ptr.vmem [resolvable:$true] %s67_s1 }
  0x18   :  { %30 = vperm.xlu0 %83, %v13_v3  }
  0x77   :  { %v17_v4 = vpop.xlane.xlu0 %16 }
  0x78   :  { %v18_v5 = vsub.f32 %v12_v0, %v17_v4 }
  0x7a   :  { %v19_v6 = vmul.f32 1.442695, %v18_v5 }
  0x7c   :  { %84 = vpow2.f32 %v19_v6 }
  0x82   :  { %v85_v7 = vpop.eup %84 }
  0x83   :  { %v21_v8 = vsel %vm14_vm0, %v85_v7, 0.0 }
  0x84   :  { %22 = vadd.xlane.f32.xlu1 %v21_v8 }
  0x8a   :  { %v31_v11 = vpop.permute.xlu0 %30 }
  0x8b   :  { %vm32_vm1 = vcmp.eq.s32.totalorder %v28_v10, %v31_v11 }
  0x8c   :  { %v33_v12 = vsel %vm32_vm1, %v12_v0, 0.0 }
  0x8d   :  { %v34_v13 = vsel %vm14_vm0, %v33_v12, 0.0 }
  0x8e   :  { %35 = vadd.xlane.f32.xlu1 %v34_v13 }
  0xf7   :  { %v23_v14 = vpop.xlane.xlu1 %22 }
  0xf8   :  { %86 = vlog2.f32 %v23_v14 }
  0xfe   :  { %v87_v15 = vpop.eup %86 }
  0xff   :  { %v25_v16 = vmul.f32 0.6931472, %v87_v15 }
 0x101   :  { %v26_v17 = vadd.f32 %v25_v16, %v17_v4  ;;  %v36_v18 = vpop.xlane.xlu1 %35 }
 0x103   :  { %v37_v19 = vsub.f32 %v26_v17, %v36_v18 }
 0x105   :  { %v78_v20 = vadd.f32 -0.5, %v37_v19 }
 0x107   :  { %v39_v21 = vmax.f32 %v78_v20, 0.0 }
 0x109   :  { %v40_v22 = vmul.f32 %v39_v21, %v39_v21 }
 0x10b   :  { %v49_v23 = vsel %vm48_vm2, %v40_v22, 0.0 }
 0x10c   :  { %50 = vadd.xlane.f32.xlu2 %v49_v23 }
 0x17f   :  { %v51_v24 = vpop.xlane.xlu2 %50 }
 0x180   :  { %v52_v25 = vrot.slane %v51_v24, 4 }
 0x182   :  { %v53_v26 = vadd.f32 %v52_v25, %v51_v24 }
 0x184   :  { %v54_v27 = vrot.slane %v53_v26, 2 }
 0x186   :  { %v55_v28 = vadd.f32 %v54_v27, %v53_v26 }
 0x188   :  { %v56_v29 = vrot.slane %v55_v28, 1 }
 0x18a   :  { %v57_v30 = vadd.f32 %v56_v29, %v55_v28 }
 0x18c   :  { %79 = vpush %v57_v30 }
 0x1bd   :  { %s80_s16 = spop %79 }
 0x1be   :  { %v59_v31 = vstv %s80_s16 }
 0x1bf   :  { %61 = vst.msk [vmem:[#allocation2] sm:$0x1] %vm60_vm3, %v59_v31 }
 0x1c0   :  { %72 = dma.vmem_to_hbm [thread:$0]  %s68_s1, 16, %s70_s15, [#allocation3]  }
 0x1c1   :  { %112 = dma.done.wait [#allocation3], 16  }
 0x1c2   :  { %113 = vsyncadd [#allocation3], 4294967280 }
 0x1c3   :  { %77 = vsyncpa [#allocation3], 1 }

</bundles_post_ra>
